<compile_context>
chip_gen: v5e
topology: v5e:2x2
jax: 0.10.0
libtpu: 0.0.40
codegen_flags: <defaults>
</compile_context>

<pallas_src>
import numpy as np
import jax
import jax.numpy as jnp
from jax.experimental import pallas as pl
from jax.experimental.pallas import tpu as pltpu


# ---------------- shape glue (mirrors the PyTorch helpers exactly) -------------
def remove_dim_get_shape(curr_shape, dim):
    assert dim > 0, "Axis must be greater than 0"
    curr_shape = list(curr_shape)
    axis_shape = curr_shape.pop(dim)
    curr_shape[dim - 1] *= axis_shape
    return curr_shape


def _new_shape(shape, dim):
    curr_shape = list(shape)
    if isinstance(dim, int):
        if dim < 0:
            dim = len(curr_shape) + dim
        return remove_dim_get_shape(curr_shape, dim)
    dims = [dd if dd >= 0 else len(curr_shape) + dd for dd in dim]
    assert len(np.unique(dims)) == len(dims), "Repeated dims are not allowed"
    for ax in sorted(dims, reverse=True):
        curr_shape = remove_dim_get_shape(curr_shape, ax)
    return curr_shape


# ------------- Pallas kernel: single HBM->HBM DMA copy (no VMEM staging) --------
def _dma_copy_kernel(x_hbm, o_hbm, sem):
    # One descriptor; the DMA engines run it at HBM roofline on v5e/v6e/v7x.
    cp = pltpu.make_async_copy(x_hbm, o_hbm, sem)
    cp.start()
    cp.wait()


def _pallas_materialized_copy(x):
    """Copy `x` into a fresh HBM buffer with one direct HBM->HBM DMA."""
    return pl.pallas_call(
        _dma_copy_kernel,
        out_shape=jax.ShapeDtypeStruct(x.shape, x.dtype),
        in_specs=[pl.BlockSpec(memory_space=pl.ANY)],
        out_specs=pl.BlockSpec(memory_space=pl.ANY),
        scratch_shapes=[pltpu.SemaphoreType.DMA(())],
    )(x)


def remove_dim_pallas(x, dim, materialize=False):
    new_shape = tuple(int(s) for s in _new_shape(x.shape, dim))

    # Highest-value change from the perf review: this op is a contiguous reshape,
    # so by default never launch a kernel / never touch HBM.
    if not materialize or x.size == 0:
        return jnp.reshape(x, new_shape)

    # Materialized path: reshape (metadata/layout work handled by XLA), then one
    # HBM->HBM DMA into a fresh buffer already holding the merged shape.
    x_merged = jnp.reshape(x, new_shape)
    return _pallas_materialized_copy(x_merged)


class RemoveDim:
    """JAX/Pallas equivalent of the PyTorch RemoveDim module (no parameters).

    materialize=False (default): metadata-only reshape (optimal, zero HBM traffic).
    materialize=True: returns a freshly materialized copy via a Pallas HBM->HBM DMA.
    """

    def __init__(self, dim, materialize=False):
        self.dim = dim
        self.materialize = materialize

    def __call__(self, input_tensor):
        return remove_dim_pallas(input_tensor, self.dim, materialize=self.materialize)


if __name__ == "__main__":
    key = jax.random.PRNGKey(0)
    # NCHW-style input: batch=2, channels=4, H=16, W=16
    x = jax.random.normal(key, (2, 4, 16, 16), dtype=jnp.float32)

    # Default (fast) path: metadata-only reshape, (2, 4, 16, 16) -> (8, 16, 16).
    ref = jnp.reshape(x, (8, 16, 16))
    out_fast = jax.block_until_ready(RemoveDim(dim=1)(x))
    assert out_fast.shape == (8, 16, 16), out_fast.shape
    assert out_fast.dtype == x.dtype
    np.testing.assert_array_equal(np.asarray(out_fast), np.asarray(ref))

    # Pallas kernel path: single HBM->HBM DMA into a fresh buffer.
    out_k = jax.block_until_ready(RemoveDim(dim=1, materialize=True)(x))
    assert out_k.shape == (8, 16, 16), out_k.shape
    assert out_k.dtype == x.dtype
    np.testing.assert_array_equal(np.asarray(out_k), np.asarray(ref))

    # list of dims (PyTorch reference merges the highest axis first):
    # (2, 4, 16, 16) --ax=2--> (2, 64, 16) --ax=1--> (128, 16)
    out2 = jax.block_until_ready(RemoveDim(dim=[-2, 1], materialize=True)(x))
    ref2 = jnp.reshape(x, (128, 16))
    assert out2.shape == (128, 16), out2.shape
    np.testing.assert_array_equal(np.asarray(out2), np.asarray(ref2))

    # Odd sizes: HBM->HBM DMA has no (8,128) lane constraints, no masked stores.
    x3 = jax.random.normal(jax.random.PRNGKey(1), (2, 3, 5, 7), dtype=jnp.float32)
    out3 = jax.block_until_ready(RemoveDim(dim=2, materialize=True)(x3))
    ref3 = jnp.reshape(x3, (2, 15, 7))
    assert out3.shape == (2, 15, 7), out3.shape
    np.testing.assert_array_equal(np.asarray(out3), np.asarray(ref3))

    print("KERNEL_OK")
</pallas_src>

<mosaic_0001>
module attributes {stable_mosaic.version = 11 : i64} {
  func.func @_dma_copy_kernel(%arg0: memref<8x16x16xf32, #tpu.memory_space<any>>, %arg1: memref<8x16x16xf32, #tpu.memory_space<any>>, %arg2: memref<!tpu.dma_semaphore, #tpu.memory_space<semaphore_mem>>) attributes {dimension_semantics = [], scalar_prefetch = 0 : i64, scratch_operands = 1 : i64, tpu.core_type = #tpu.core_type<tc>} {
    tpu.enqueue_dma source(%arg0 : memref<8x16x16xf32, #tpu.memory_space<any>>) target(%arg1 : memref<8x16x16xf32, #tpu.memory_space<any>>) target_semaphore(%arg2 : memref<!tpu.dma_semaphore, #tpu.memory_space<semaphore_mem>>)
    tpu.wait_dma2 semaphore(%arg2 : memref<!tpu.dma_semaphore, #tpu.memory_space<semaphore_mem>>) src(%arg0 : memref<8x16x16xf32, #tpu.memory_space<any>>) dst(%arg1 : memref<8x16x16xf32, #tpu.memory_space<any>>)
    return
  }
}

</mosaic_0001>

<bundles_post_ra>
// kernel: tpu_custom_call.1
= control target key start
LH: loop header
LB: loop body
LE: loop exit
PB: predicated region body
PF: predicated region fallthrough
CT: control target
= control target key end

     0   :  { %s33_s12 = smov [#allocation2]   ;;  %s34_s13 = smov [#allocation3]   ;;  %s52_s0 = inlined_call_operand.hbm [shape: f32[8,16,16], index: 0, kind: input, shape index: {}]   ;;  %s53_s1 = inlined_call_operand.hbm [shape: f32[8,16,16], index: 1, kind: output, shape index: {}]  }
   0x1   :  { %s10_s8 = sshll.u32 %s52_s0, 4  ;;  %s12_s11 = sshll.u32 %s53_s1, 4  ;;  %s11_s8 = int_to_ptr.hbm [resolvable:$true] %s10_s8  ;;  %s13_s11 = int_to_ptr.hbm [resolvable:$true] %s12_s11 }
   0x2   :  { %s35_s14 = smov 0  }
   0x3   :  { %16 = dma.general %s11_s8, 2048, %s13_s11, %s33_s12, %s34_s13, [#allocation4], %s35_s14, 0  }
   0x4   :  { %31 = dma.done.wait [#allocation2], 2048 }
   0x5   :  { %32 = vsyncadd [#allocation2], 4294965248 }
   0x6   :  { %21 = vsyncmov [#allocation2] }
   0x9   :  { %s22_s15 = vpop.sfrf %21 }
   0xa   :  { %p27_p0 = scmp.ne.s32.totalorder %s22_s15, 0 }
   0xc   :  { %26 = shalt.err (%p27_p0)  }

</bundles_post_ra>
